<compile_context>
chip_gen: v7x
topology: tpu7x:2x2x1
jax: 0.10.0
libtpu: 0.0.40
codegen_flags: <defaults>
</compile_context>

<pallas_src>
import jax
import jax.numpy as jnp
from jax.experimental import pallas as pl
from jax.experimental.pallas import tpu as pltpu

_LANES = 128              # vreg / VMEM lane width
_MAX_TILE_ROWS = 4096     # 4096 * 128 * 4 B = 2 MiB per block
_MIN_GRID_STEPS = 4       # >= 2 grid steps per TensorCore on v7x
_PALLAS_MIN_ELEMS = 4096  # below this the pallas_call launch is pure latency overhead


def linear_kernel(x_ref, w_ref, b_ref, o_ref):
    # x_ref: (tile_r, 128) f32 VMEM tile of the lane-dense batch slab
    # w_ref, b_ref: (1,) f32 scalars in SMEM
    # Pure VPU fused multiply-add: y = x * w + b
    o_ref[...] = x_ref[...] * w_ref[0] + b_ref[0]


def simple_model_forward(x, weight, bias):
    """x: (B, 1) f32; weight: (1, 1) f32 (PyTorch [out, in] layout); bias: (1,) f32."""
    B = x.shape[0]
    x = x.astype(jnp.float32)
    w = weight.reshape(()).astype(jnp.float32)
    b = bias.reshape(()).astype(jnp.float32)

    # Fast path: tiny batches, or batches whose length is not a multiple of 128.
    # A pad/slice repack would materialize an extra read+write of the data, which
    # costs more than the Pallas call saves; fused XLA elementwise is already at
    # HBM roofline for this op.
    if B < _PALLAS_MIN_ELEMS or B % _LANES != 0:
        # TODO(synk): a masked in-kernel tail (manual DMA of the ragged remainder) could
        # keep non-multiple-of-128 batches on the Pallas path without a repack copy.
        return (x.reshape(B) * w + b).reshape(B, 1)

    rows = B // _LANES
    # Zero-copy bitcast: (B, 1) f32 row-major -> (rows, 128) lane-dense slab.
    x_slab = x.reshape(rows, _LANES)

    # tile_r: multiple of 8 (sublane rule), capped at 2 MiB blocks, and sized so the
    # grid has >= _MIN_GRID_STEPS steps so both v7x TensorCores get work.
    tile_r = max(8, min(_MAX_TILE_ROWS, (rows // _MIN_GRID_STEPS) // 8 * 8))
    grid = (pl.cdiv(rows, tile_r),)  # last block may be partial; Pallas masks its stores

    out_slab = pl.pallas_call(
        linear_kernel,
        out_shape=jax.ShapeDtypeStruct((rows, _LANES), jnp.float32),
        grid=grid,
        in_specs=[
            pl.BlockSpec((tile_r, _LANES), lambda i: (i, 0)),    # x tiles (VMEM)
            pl.BlockSpec(memory_space=pltpu.MemorySpace.SMEM),   # weight scalar
            pl.BlockSpec(memory_space=pltpu.MemorySpace.SMEM),   # bias scalar
        ],
        out_specs=pl.BlockSpec((tile_r, _LANES), lambda i: (i, 0)),
        compiler_params=pltpu.CompilerParams(
            dimension_semantics=("parallel",),   # shard batch tiles across TCs (v7x)
            # 2 MiB blocks need only ~8 MiB; 32 MiB is safe on every generation
            # (incl. v7x). Raise toward 64+ MiB on v5e/v6e only if tiles grow.
            vmem_limit_bytes=32 * 1024 * 1024,
        ),
    )(x_slab, w.reshape(1), b.reshape(1))

    return out_slab.reshape(B, 1)


if __name__ == "__main__":
    key = jax.random.PRNGKey(0)
    kx, kw, kb = jax.random.split(key, 3)

    # nn.Linear(1, 1) parameters: weight (out_features=1, in_features=1), bias (1,)
    weight = jax.random.uniform(kw, (1, 1), dtype=jnp.float32, minval=-1.0, maxval=1.0)
    bias = jax.random.uniform(kb, (1,), dtype=jnp.float32, minval=-1.0, maxval=1.0)

    # Exercise every wrapper path:
    #   B=8    -> tiny-batch XLA fast path
    #   B=4096 -> Pallas path, rows=32, tile_r=8, grid=4 (even division)
    #   B=4736 -> Pallas path, rows=37, grid=5 with a masked partial last block
    #   B=4100 -> not lane-aligned -> XLA fallback
    for batch in (8, 4096, 4736, 4100):
        x = jax.random.normal(jax.random.fold_in(kx, batch), (batch, 1), dtype=jnp.float32)
        out = jax.block_until_ready(simple_model_forward(x, weight, bias))
        ref = x @ weight.T + bias
        assert out.shape == (batch, 1)
        assert jnp.allclose(out, ref, atol=1e-6), f"mismatch vs reference at B={batch}"

    print("KERNEL_OK")
</pallas_src>

<mosaic_0001>
module attributes {stable_mosaic.version = 11 : i64} {
  func.func @linear_kernel(%arg0: i32, %arg1: memref<8x128xf32, #tpu.memory_space<vmem>>, %arg2: memref<1xf32, #tpu.memory_space<smem>>, %arg3: memref<1xf32, #tpu.memory_space<smem>>, %arg4: memref<8x128xf32, #tpu.memory_space<vmem>>) attributes {dimension_semantics = [#tpu.dimension_semantics<parallel>], iteration_bounds = array<i64: 4>, scalar_prefetch = 0 : i64, scratch_operands = 0 : i64, tpu.core_type = #tpu.core_type<tc>, window_params = [{transform_indices = @transform_0, window_bounds = array<i64: 8, 128>}, {transform_indices = @transform_1, window_bounds = array<i64: 1>}, {transform_indices = @transform_2, window_bounds = array<i64: 1>}, {transform_indices = @transform_3, window_bounds = array<i64: 8, 128>}]} {
    %c0 = arith.constant 0 : index
    %c0_0 = arith.constant 0 : index
    %0 = vector.load %arg1[%c0, %c0_0] : memref<8x128xf32, #tpu.memory_space<vmem>>, vector<8x128xf32>
    %c0_1 = arith.constant 0 : index
    %1 = memref.load %arg2[%c0_1] : memref<1xf32, #tpu.memory_space<smem>>
    %2 = vector.broadcast %1 : f32 to vector<8x128xf32>
    %3 = arith.mulf %0, %2 : vector<8x128xf32>
    %c0_2 = arith.constant 0 : index
    %4 = memref.load %arg3[%c0_2] : memref<1xf32, #tpu.memory_space<smem>>
    %5 = vector.broadcast %4 : f32 to vector<8x128xf32>
    %6 = arith.addf %3, %5 : vector<8x128xf32>
    %c0_3 = arith.constant 0 : index
    %c0_4 = arith.constant 0 : index
    %7 = vector.load %arg4[%c0_3, %c0_4] : memref<8x128xf32, #tpu.memory_space<vmem>>, vector<8x128xf32>
    tpu.vector_store %arg4[%c0_3, %c0_4], %6 {strides = array<i32>} : memref<8x128xf32, #tpu.memory_space<vmem>>, vector<8x128xf32>,
    return
  }
  func.func @transform_0(%arg0: i32) -> (i32, i32) {
    %c0_i32 = arith.constant 0 : i32
    %c0_i32_0 = arith.constant 0 : i32
    return %arg0, %c0_i32 : i32, i32
  }
  func.func @transform_1(%arg0: i32) -> i32 {
    %c0_i32 = arith.constant 0 : i32
    %c0_i32_0 = arith.constant 0 : i32
    return %c0_i32 : i32
  }
  func.func @transform_2(%arg0: i32) -> i32 {
    %c0_i32 = arith.constant 0 : i32
    %c0_i32_0 = arith.constant 0 : i32
    return %c0_i32 : i32
  }
  func.func @transform_3(%arg0: i32) -> (i32, i32) {
    %c0_i32 = arith.constant 0 : i32
    %c0_i32_0 = arith.constant 0 : i32
    return %arg0, %c0_i32 : i32, i32
  }
}

</mosaic_0001>

<bundles_post_ra>
// kernel: tpu_custom_call.1
= control target key start
LH: loop header
LB: loop body
LE: loop exit
PB: predicated region body
PF: predicated region fallthrough
CT: control target
= control target key end

     0   :  { %s623_s0 = inlined_call_operand.hbm [shape: f32[32,128], index: 0, kind: input, shape index: {}]   ;;  %s624_s1 = inlined_call_operand.<no memory space> [shape: f32[1], index: 1, kind: input, shape index: {}]   ;;  %s625_s2 = inlined_call_operand.<no memory space> [shape: f32[1], index: 2, kind: input, shape index: {}]   ;;  %s626_s3 = inlined_call_operand.hbm [shape: f32[32,128], index: 3, kind: output, shape index: {}]  }
   0x1   :  { %8 = sst [smem:[#allocation2]] %s624_s1 }
   0x2   :  { %9 = sst [smem:[#allocation3]] %s625_s2 }
   0x3   :  { %10 = vsyncpa [#allocation5], 0 }
   0x4   :  { %12 = vsyncpa [#allocation5 + $0x1], 0 }
   0x5   :  { %13 = vsyncpa [#allocation6], 0 }
   0x6   :  { %15 = vsyncpa [#allocation6 + $0x1], 0  ;;  %s464_s16 = smov 0   ;;  %s466_s17 = smov 0  }
   0x7   :  { %s468_s18 = smov 0   ;;  %s470_s19 = smov 0  }
   0x8 LB: > { %s485_s1 = sadd.s32 4294967295, %s434_s19   ;;  %s280_s2 = sadd.s32 4294967294, %s434_s19   ;;  %s434_s19 = sphi %s470_s19, %s640_s19   ;;  %s430_s18 = sphi %s468_s18, %s639_s18   ;;  %s426_s17 = sphi %s466_s17, %s638_s17   ;;  %s422_s16 = sphi %s464_s16, %s637_s16  }
   0x9   : > { %s489_s20 = sadd.s32 1, %s434_s19   ;;  %s28_s21 = sadd.s32 1, %s430_s18 }
   0xa   : > { %s25_s22 = ssub.s32 %s434_s19, %s489_s20  ;;  %p35_p0 = scmp.ne.s32.totalorder %s430_s18, %s426_s17 }
   0xb   : > { %p26_p1 = scmp.eq.s32.totalorder %s25_s22, 0  ;;  %p36_p2 = scmp.eq.s32.totalorder %s434_s19, 0 }
   0xc   : > { %p41_p3 = scmp.ne.s32.totalorder %s426_s17, %s422_s16  ;;  %p42_p4 = scmp.eq.s32.totalorder %s485_s1, 0 }
   0xd   : > { %s501_s23 = scalar_select %p26_p1, %s430_s18, %s28_s21  }
   0xe   : > { %p503_p5 = por %p36_p2, %p35_p0  ;;  %p507_p6 = por %p42_p4, %p41_p3 }
   0xf   : > { %p107_p7 = scmp.eq.s32.totalorder %s485_s1, 3  ;;  %p113_p8 = scmp.eq.s32.totalorder %s280_s2, 3 }
  0x10   : > { %p304_p9 = scmp.lt.s32.totalorder %s434_s19, 4  ;;  %s139_s28 = sand.u32 1, %s430_s18  }
  0x11   : > { %p513_p10 = por %p107_p7, %p35_p0  ;;  %p517_p11 = por %p113_p8, %p41_p3 }
  0x12   : > { %s284_s29 = sshll.u32 %s434_s19, 7  ;;  %s283_s30 = sshll.u32 %s139_s28, 3 }
  0x13   : > { %s630_s26 = scalar_select %p513_p10, 1, 0 }
  0x14   : > { %s631_s27 = scalar_select %p517_p11, 1, 0 }
  0x15   : > { %s526_s6 = scalar_lea.hbm %s623_s0, %s284_s29  ;;  %s143_s7 = scalar_lea.vmem [#allocation4], %s283_s30 }
  0x16   : > { %s150_s8 = sshll.u32 %s143_s7, 4  ;;  %p530_p12 = pnand %p304_p9, %p503_p5  ;;  %s534_s8 = int_to_ptr.vmem [resolvable:$true] %s150_s8 }
  0x17   : > { %s140_s10 = scalar_lea.sflag [#allocation5], %s139_s28  ;;  %s338_s11 = scalar_lea.hbm %s526_s6, 128 }
  0x18   : > { %p339_p1 = scmp.ne.s32.totalorder %s526_s6, %s338_s11  ;;  %p340_p2 = pneg %p530_p12 }
  0x19   : > { %s343_s14 = scalar_lea.hbm %s623_s0, 512  ;;  %p344_p5 = scmp.lt.u32.totalorder %s526_s6, %s623_s0 }
  0x1a   : > { %p341_p3 = pnand %p340_p2, %p339_p1  ;;  %p345_p7 = scmp.lt.u32.totalorder %s343_s14, %s338_s11 }
  0x1b   : > { %p347_p9 = scmp.lt.u32.totalorder %s338_s11, %s526_s6 }
  0x1c   : > { %p342_p4 = pneg %p341_p3  ;;  %p346_p8 = por %p345_p7, %p344_p5 }
  0x1e   : > { %p348_p13 = por %p347_p9, %p346_p8 }
  0x20   : > { %p349_p0 = pnand %p348_p13, %p342_p4 }
  0x22   : > { %352 = shalt.err (!%p349_p0)
}
  0x23   : > { %s353_s21 = scalar_lea.vmem %s534_s8, 128  ;;  %s436_s22 = smov [#allocation4]  }
  0x24   : > { %p354_p1 = scmp.ne.s32.totalorder %s534_s8, %s353_s21  ;;  %s358_s24 = sshll.u32 %s436_s22, 4  ;;  %s359_s24 = int_to_ptr.vmem [resolvable:$false] %s358_s24 }
  0x25   : > { %s360_s28 = scalar_lea.vmem %s359_s24, 256  ;;  %p361_p10 = scmp.lt.s32.totalorder %s534_s8, %s359_s24 }
  0x26   : > { %p356_p3 = pnand %p354_p1, %p340_p2  ;;  %p362_p5 = scmp.lt.s32.totalorder %s360_s28, %s353_s21 }
  0x28   : > { %p357_p11 = pneg %p356_p3  ;;  %p363_p7 = por %p362_p5, %p361_p10 }
  0x2a   : > { %p364_p8 = pnand %p363_p7, %p357_p11 }
  0x2c   : > { %367 = shalt.err (!%p364_p8)
}
  0x2d   : > { %299 = dma.hbm_to_vmem [thread:$0]  (!%p530_p12), %s526_s6, 128, %s534_s8, %s140_s10  }
  0x2e   : > { %p633_p13 = scmp.lt.s32.totalorder %s434_s19, 5  ;;  %p634_p0 = scmp.ge.s32.totalorder %s434_s19, 1 }
  0x30   : > { %p156_p2 = pnand %p634_p0, %p633_p13 }
  0x31   : > { %s568_s29 = sand.u32 (!%p156_p2), 1, %s426_s17  }
  0x32   : > { %159 = sbr.rel (%p156_p2) target bundleno = 85 (0x55), region = 32  ;;  %s286_s30 = sshll.u32 (!%p156_p2), %s568_s29, 3 }
  0x33   : > { %s162_s4 = scalar_lea.sflag (!%p156_p2), [#allocation5], %s568_s29  ;;  %s165_s5 = scalar_lea.vmem (!%p156_p2), [#allocation4], %s286_s30 }
  0x39   : > { %413 = dma.done.wait (%p507_p6), %s162_s4, 128  }
  0x3a   : > { %415 = vsyncadd (%p507_p6), %s162_s4, 4294967168  ;;  %s189_s6 = sld [smem:[#allocation2]]  ;;  %v188_v0 = vld [vmem:[%s165_s5] sm:$0xff]  ;;  %s187_s8 = scalar_lea.vmem [#allocation7], %s286_s30 }
  0x3b   : > { %s192_s7 = sld [smem:[#allocation3]]  ;;  %s210_s9 = sshll.u32 %s187_s8, 4  ;;  %s577_s9 = int_to_ptr.vmem [resolvable:$true] %s210_s9 }
  0x3c   : > { %s289_s10 = sshll.u32 %s485_s1, 7  ;;  %s197_s13 = scalar_lea.sflag [#allocation6], %s568_s29 }
  0x3d   : > { %s582_s25 = scalar_lea.hbm %s626_s3, %s289_s10  ;;  %s368_s14 = scalar_lea.vmem %s577_s9, 128 }
  0x3e   : > { %p369_p6 = scmp.ne.s32.totalorder %s577_s9, %s368_s14  ;;  %p635_p10 = scmp.ne.s32.totalorder %s630_s26, 0 }
  0x3f   : > { %s437_s1 = smov [#allocation7]  }
  0x40   : > { %v190_v1 = vstv %s189_s6  ;;  %p370_p11 = pnand %p369_p6, %p635_p10  ;;  %s372_s15 = sshll.u32 %s437_s1, 4  ;;  %s373_s15 = int_to_ptr.vmem [resolvable:$false] %s372_s15 }
  0x41   : > { %v193_v2 = vstv %s192_s7  ;;  %v191_v3 = vmul.f32 %v190_v1, %v188_v0  ;;  %s374_s2 = scalar_lea.vmem %s373_s15, 256  ;;  %p375_p4 = scmp.lt.s32.totalorder %s577_s9, %s373_s15 }
  0x42   : > { %p371_p12 = pneg %p370_p11  ;;  %p376_p9 = scmp.lt.s32.totalorder %s374_s2, %s368_s14 }
  0x43   : > { %v194_v4 = vadd.f32 %v193_v2, %v191_v3 }
  0x44   : > { %p377_p1 = por %p376_p9, %p375_p4 }
  0x45   : > { %195 = vst [vmem:[%s187_s8] sm:$0xff] %v194_v4 }
  0x46   : > { %p378_p3 = pnand %p377_p1, %p371_p12 }
  0x48   : > { %381 = shalt.err (!%p378_p3)
}
  0x49   : > { %s382_s21 = scalar_lea.hbm %s582_s25, 128  ;;  %s386_s28 = scalar_lea.hbm %s626_s3, 512 }
  0x4a   : > { %p383_p5 = scmp.ne.s32.totalorder %s582_s25, %s382_s21  ;;  %p387_p13 = scmp.lt.u32.totalorder %s582_s25, %s626_s3 }
  0x4b   : > { %p388_p0 = scmp.lt.u32.totalorder %s386_s28, %s382_s21  ;;  %p390_p6 = scmp.lt.u32.totalorder %s382_s21, %s582_s25 }
  0x4c   : > { %p384_p7 = pnand %p383_p5, %p635_p10 }
  0x4d   : > { %p389_p2 = por %p388_p0, %p387_p13 }
  0x4e   : > { %p385_p8 = pneg %p384_p7 }
  0x4f   : > { %p391_p11 = por %p390_p6, %p389_p2 }
  0x51   : > { %p392_p12 = pnand %p391_p11, %p385_p8 }
  0x53   : > { %395 = shalt.err (!%p392_p12)
}
  0x54   : > { %294 = dma.vmem_to_hbm [thread:$0]  (%p635_p10), %s577_s9, 128, %s582_s25, %s197_s13  }
  0x55 PF: > { %p305_p4 = scmp.ge.s32.totalorder %s434_s19, 2  ;;  %s222_s4 = sand.u32 1, %s422_s16  }
  0x56   : > { %p636_p9 = scmp.ne.s32.totalorder %s631_s27, 0  ;;  %s223_s5 = scalar_lea.sflag [#allocation6], %s222_s4 }
  0x58   : > { %p301_p1 = pnand %p305_p4, %p636_p9 }
  0x5a   : > { %417 = dma.done.wait (!%p301_p1), %s223_s5, 128  }
  0x5b   : > { %419 = vsyncadd (!%p301_p1), %s223_s5, 4294967168  ;;  %p18_p3 = scmp.ge.s32.totalorder %s489_s20, 6   ;;  %s637_s16 = smov %s426_s17 }
  0x5c   : > { %s638_s17 = smov %s430_s18  ;;  %s639_s18 = smov %s501_s23 }
  0x5d   : > { %s640_s19 = smov %s489_s20  ;;  %20 = sbr.rel (!%p18_p3) target bundleno = 8 (0x8), region = 77 }
  0x64   :  { %228 = vsyncpa [#allocation5], 1 }
  0x65   :  { %230 = vsyncpa [#allocation5 + $0x1], 1 }
  0x66   :  { %231 = vsyncpa [#allocation6], 1 }
  0x67   :  { %233 = vsyncpa [#allocation6 + $0x1], 1 }

</bundles_post_ra>
